<compile_context>
chip_gen: v6e
topology: v6e:2x2x1
jax: 0.10.0
libtpu: 0.0.40
codegen_flags: <defaults>
</compile_context>

<pallas_src>
import functools

import jax
import jax.numpy as jnp
import numpy as np
from jax.experimental import pallas as pl
from jax.experimental.pallas import tpu as pltpu


def _pick_tile(dim, target):
    """Largest multiple-of-128 divisor of `dim` that is <= target (fallback: dim)."""
    t = min(target, dim)
    t = (t // 128) * 128
    while t >= 128:
        if dim % t == 0:
            return t
        t -= 128
    return dim


def proj_head_kernel(x_ref, w1_ref, b1_ref, w2_ref, b2_ref, o_ref,
                     h_acc, out_acc):
    j = pl.program_id(1)           # D_H tile index (reduction into out_acc)
    k = pl.program_id(2)           # D_IN tile index (reduction into h_acc)
    nj = pl.num_programs(1)
    nk = pl.num_programs(2)

    @pl.when(k == 0)
    def _():
        h_acc[...] = jnp.zeros_like(h_acc)

    # Layer 1 partial matmul: accumulate the hidden tile in f32 VMEM.
    h_acc[...] += jnp.dot(x_ref[...], w1_ref[...],
                          preferred_element_type=jnp.float32)

    @pl.when(k == nk - 1)
    def _():
        # Layer-1 epilogue for this D_H tile: bias + ReLU (rides free VPU slots).
        h = jnp.maximum(h_acc[...] + b1_ref[...], 0.0)

        @pl.when(j == 0)
        def _():
            out_acc[...] = jnp.zeros_like(out_acc)

        # Fused layer-2 partial matmul into the resident output accumulator.
        out_acc[...] += jnp.dot(h.astype(w2_ref.dtype), w2_ref[...],
                                preferred_element_type=jnp.float32)

        @pl.when(j == nj - 1)
        def _():
            o_ref[...] = jnp.maximum(out_acc[...] + b2_ref[...],
                                     0.0).astype(o_ref.dtype)


@functools.partial(jax.jit,
                   static_argnames=("tk_target", "tn_target",
                                    "num_out_splits", "weight_dtype"))
def proj_head_forward(x_nchw, conv_w, conv_b, w1, b1, w2, b2, *,
                      tk_target=8192, tn_target=1024, num_out_splits=1,
                      weight_dtype=jnp.bfloat16):
    """x_nchw: (B, 1, H, W).  w1:(D_IN,D_H), w2:(D_H,D_OUT) in (in,out) layout.

    Returns (B, D_OUT) f32.  num_out_splits>1 adds a leading 'parallel' grid
    axis over D_OUT (only useful when compute-bound, e.g. large batch on v7x).
    """
    B = x_nchw.shape[0]
    d_in, d_h = w1.shape
    d_out = w2.shape[1]

    # Flatten exactly like torch's .view(B, -1) on NCHW.
    x_flat = x_nchw.reshape(B, -1)
    assert x_flat.shape[1] == d_in, (x_flat.shape, d_in)

    # Fold the 1x1 single-channel conv (elementwise affine) into layer 1.
    w1_eff = conv_w * w1
    b1_eff = (b1 + conv_b * jnp.sum(w1, axis=0)).astype(jnp.float32)

    # bf16 streaming halves HBM bytes; f32 accumulators keep precision.
    x_c = x_flat.astype(weight_dtype)
    w1_c = w1_eff.astype(weight_dtype)
    w2_c = w2.astype(weight_dtype)
    b1_2d = b1_eff.reshape(1, d_h)
    b2_2d = b2.reshape(1, d_out).astype(jnp.float32)

    # Pad batch to a multiple of 8 sublanes (avoids masked partial stores).
    B_pad = max(8, -(-B // 8) * 8)
    if B_pad != B:
        x_c = jnp.pad(x_c, ((0, B_pad - B), (0, 0)))

    tk = _pick_tile(d_in, tk_target)
    tn = _pick_tile(d_h, tn_target)
    assert d_out % num_out_splits == 0
    to = d_out // num_out_splits

    n_o, n_j, n_k = d_out // to, d_h // tn, d_in // tk

    bytes_per = int(np.dtype(weight_dtype).itemsize)
    cost = pl.CostEstimate(
        flops=2 * B_pad * (d_in * d_h + d_h * d_out),
        transcendentals=0,
        bytes_accessed=int(d_in * d_h * bytes_per * n_o            # W1 stream
                           + d_h * d_out * bytes_per               # W2 stream
                           + B_pad * d_in * bytes_per * n_j * n_o  # x re-reads
                           + B_pad * d_out * 4),                   # output
    )

    grid_spec = pltpu.PrefetchScalarGridSpec(
        num_scalar_prefetch=0,
        grid=(n_o, n_j, n_k),
        in_specs=[
            pl.BlockSpec((B_pad, tk), lambda o, j, k: (0, k)),   # x
            pl.BlockSpec((tk, tn),    lambda o, j, k: (k, j)),   # W1'
            pl.BlockSpec((1, tn),     lambda o, j, k: (0, j)),   # b1'
            pl.BlockSpec((tn, to),    lambda o, j, k: (j, o)),   # W2
            pl.BlockSpec((1, to),     lambda o, j, k: (0, o)),   # b2
        ],
        out_specs=pl.BlockSpec((B_pad, to), lambda o, j, k: (0, o)),
        scratch_shapes=[
            pltpu.VMEM((B_pad, tn), jnp.float32),   # hidden-tile accumulator
            pltpu.VMEM((B_pad, to), jnp.float32),   # output accumulator
        ],
    )

    out_padded = pl.pallas_call(
        proj_head_kernel,
        out_shape=jax.ShapeDtypeStruct((B_pad, d_out), jnp.float32),
        grid_spec=grid_spec,
        compiler_params=pltpu.CompilerParams(
            dimension_semantics=("parallel", "arbitrary", "arbitrary"),
            # Default tiles need ~37 MiB double-buffered at the real shapes;
            # 48 MiB leaves headroom and fits all generations (v7x physical
            # VMEM is 64 MiB; v5e/v6e have 128 MiB).
            vmem_limit_bytes=48 * 1024 * 1024,
        ),
        cost_estimate=cost,
    )(x_c, w1_c, b1_2d, w2_c, b2_2d)

    return out_padded[:B]


if __name__ == "__main__":
    # Small shapes consistent with the module structure.
    # (Real module: H=W=144 -> D_IN=20736, D_H=4096, D_OUT=2048.)
    B, C, H, W = 2, 1, 16, 16
    D_IN = C * H * W          # 256
    D_H = 128
    D_OUT = 64

    key = jax.random.PRNGKey(0)
    k_x, k_cw, k_cb, k_w1, k_b1, k_w2, k_b2 = jax.random.split(key, 7)

    x = jax.random.normal(k_x, (B, C, H, W), dtype=jnp.float32)

    conv_w = jax.random.normal(k_cw, (), dtype=jnp.float32) * 0.5
    conv_b = jax.random.normal(k_cb, (), dtype=jnp.float32) * 0.1
    w1 = jax.random.normal(k_w1, (D_IN, D_H), dtype=jnp.float32) / np.sqrt(D_IN)
    b1 = jax.random.normal(k_b1, (D_H,), dtype=jnp.float32) * 0.05
    w2 = jax.random.normal(k_w2, (D_H, D_OUT), dtype=jnp.float32) / np.sqrt(D_H)
    b2 = jax.random.normal(k_b2, (D_OUT,), dtype=jnp.float32) * 0.05

    out = proj_head_forward(x, conv_w, conv_b, w1, b1, w2, b2)
    out = jax.block_until_ready(out)

    # Reference (numpy) mimicking the kernel's bf16-operand / f32-accumulate
    # numerics, with the same conv fold.
    def to_bf16_f32(a):
        return np.asarray(jnp.asarray(a).astype(jnp.bfloat16).astype(jnp.float32))

    x_flat = np.asarray(x).reshape(B, -1)
    w1_np = np.asarray(w1)
    w1_eff = float(np.asarray(conv_w)) * w1_np
    b1_eff = np.asarray(b1) + float(np.asarray(conv_b)) * w1_np.sum(axis=0)

    xb = to_bf16_f32(x_flat)
    w1b = to_bf16_f32(w1_eff)
    w2b = to_bf16_f32(np.asarray(w2))

    h_ref = np.maximum(xb @ w1b + b1_eff, 0.0)
    o_ref = np.maximum(to_bf16_f32(h_ref) @ w2b + np.asarray(b2), 0.0)

    np.testing.assert_allclose(np.asarray(out), o_ref, rtol=1e-2, atol=1e-2)

    print("KERNEL_OK")
</pallas_src>

<mosaic_0001>
module attributes {stable_mosaic.version = 11 : i64} {
  func.func @proj_head_kernel(%arg0: i32, %arg1: i32, %arg2: i32, %arg3: memref<8x256xbf16, #tpu.memory_space<vmem>>, %arg4: memref<256x128xbf16, #tpu.memory_space<vmem>>, %arg5: memref<1x128xf32, #tpu.memory_space<vmem>>, %arg6: memref<128x64xbf16, #tpu.memory_space<vmem>>, %arg7: memref<1x64xf32, #tpu.memory_space<vmem>>, %arg8: memref<8x64xf32, #tpu.memory_space<vmem>>, %arg9: memref<8x128xf32, #tpu.memory_space<vmem>>, %arg10: memref<8x64xf32, #tpu.memory_space<vmem>>) attributes {dimension_semantics = [#tpu.dimension_semantics<parallel>, #tpu.dimension_semantics<arbitrary>, #tpu.dimension_semantics<arbitrary>], iteration_bounds = array<i64: 1, 1, 1>, scalar_prefetch = 0 : i64, scratch_operands = 2 : i64, tpu.core_type = #tpu.core_type<tc>, window_params = [{transform_indices = @transform_0, window_bounds = array<i64: 8, 256>}, {transform_indices = @transform_1, window_bounds = array<i64: 256, 128>}, {transform_indices = @transform_2, window_bounds = array<i64: 1, 128>}, {transform_indices = @transform_3, window_bounds = array<i64: 128, 64>}, {transform_indices = @transform_4, window_bounds = array<i64: 1, 64>}, {transform_indices = @transform_5, window_bounds = array<i64: 8, 64>}]} {
    %c0_i32 = arith.constant 0 : i32
    %0 = arith.cmpi eq, %arg2, %c0_i32 : i32
    %1 = arith.extui %0 : i1 to i32
    %c0_i32_0 = arith.constant 0 : i32
    %2 = arith.cmpi ne, %1, %c0_i32_0 : i32
    scf.if %2 {
      %cst_10 = arith.constant 0.000000e+00 : f32
      %12 = vector.broadcast %cst_10 : f32 to vector<8x128xf32>
      %c0_11 = arith.constant 0 : index
      %c0_12 = arith.constant 0 : index
      %13 = vector.load %arg9[%c0_11, %c0_12] : memref<8x128xf32, #tpu.memory_space<vmem>>, vector<8x128xf32>
      tpu.vector_store %arg9[%c0_11, %c0_12], %12 {strides = array<i32>} : memref<8x128xf32, #tpu.memory_space<vmem>>, vector<8x128xf32>,
    } else {
    }
    %c0 = arith.constant 0 : index
    %c0_1 = arith.constant 0 : index
    %3 = vector.load %arg9[%c0, %c0_1] : memref<8x128xf32, #tpu.memory_space<vmem>>, vector<8x128xf32>
    %c0_2 = arith.constant 0 : index
    %c0_3 = arith.constant 0 : index
    %4 = vector.load %arg3[%c0_2, %c0_3] : memref<8x256xbf16, #tpu.memory_space<vmem>>, vector<8x256xbf16>
    %c0_4 = arith.constant 0 : index
    %c0_5 = arith.constant 0 : index
    %5 = vector.load %arg4[%c0_4, %c0_5] : memref<256x128xbf16, #tpu.memory_space<vmem>>, vector<256x128xbf16>
    %cst = arith.constant dense<0.000000e+00> : vector<8x128xf32>
    %6 = tpu.matmul %4, %5, %cst {dimension_numbers = #tpu.dot_dimension_numbers<[1], [0], [0], [1], [0, 0, 1, 1], [], []>} : vector<8x256xbf16>, vector<256x128xbf16>, vector<8x128xf32> -> vector<8x128xf32>
    %7 = arith.addf %3, %6 : vector<8x128xf32>
    %c0_6 = arith.constant 0 : index
    %c0_7 = arith.constant 0 : index
    %8 = vector.load %arg9[%c0_6, %c0_7] : memref<8x128xf32, #tpu.memory_space<vmem>>, vector<8x128xf32>
    tpu.vector_store %arg9[%c0_6, %c0_7], %7 {strides = array<i32>} : memref<8x128xf32, #tpu.memory_space<vmem>>, vector<8x128xf32>,
    %c0_i32_8 = arith.constant 0 : i32
    %9 = arith.cmpi eq, %arg2, %c0_i32_8 : i32
    %10 = arith.extui %9 : i1 to i32
    %c0_i32_9 = arith.constant 0 : i32
    %11 = arith.cmpi ne, %10, %c0_i32_9 : i32
    scf.if %11 {
      %c0_10 = arith.constant 0 : index
      %c0_11 = arith.constant 0 : index
      %12 = vector.load %arg9[%c0_10, %c0_11] : memref<8x128xf32, #tpu.memory_space<vmem>>, vector<8x128xf32>
      %c0_12 = arith.constant 0 : index
      %c0_13 = arith.constant 0 : index
      %13 = vector.load %arg5[%c0_12, %c0_13] : memref<1x128xf32, #tpu.memory_space<vmem>>, vector<1x128xf32>
      %14 = vector.broadcast %13 : vector<1x128xf32> to vector<8x128xf32>
      %15 = arith.addf %12, %14 : vector<8x128xf32>
      %cst_14 = arith.constant 0.000000e+00 : f32
      %16 = vector.broadcast %cst_14 : f32 to vector<8x128xf32>
      %17 = arith.maximumf %15, %16 : vector<8x128xf32>
      %c0_i32_15 = arith.constant 0 : i32
      %18 = arith.cmpi eq, %arg1, %c0_i32_15 : i32
      %19 = arith.extui %18 : i1 to i32
      %c0_i32_16 = arith.constant 0 : i32
      %20 = arith.cmpi ne, %19, %c0_i32_16 : i32
      scf.if %20 {
        %cst_26 = arith.constant 0.000000e+00 : f32
        %30 = vector.broadcast %cst_26 : f32 to vector<8x64xf32>
        %c0_27 = arith.constant 0 : index
        %c0_28 = arith.constant 0 : index
        %31 = vector.load %arg10[%c0_27, %c0_28] : memref<8x64xf32, #tpu.memory_space<vmem>>, vector<8x64xf32>
        tpu.vector_store %arg10[%c0_27, %c0_28], %30 {strides = array<i32>} : memref<8x64xf32, #tpu.memory_space<vmem>>, vector<8x64xf32>,
      } else {
      }
      %c0_17 = arith.constant 0 : index
      %c0_18 = arith.constant 0 : index
      %21 = vector.load %arg10[%c0_17, %c0_18] : memref<8x64xf32, #tpu.memory_space<vmem>>, vector<8x64xf32>
      %22 = arith.truncf %17 : vector<8x128xf32> to vector<8x128xbf16>
      %c0_19 = arith.constant 0 : index
      %c0_20 = arith.constant 0 : index
      %23 = vector.load %arg6[%c0_19, %c0_20] : memref<128x64xbf16, #tpu.memory_space<vmem>>, vector<128x64xbf16>
      %cst_21 = arith.constant dense<0.000000e+00> : vector<8x64xf32>
      %24 = tpu.matmul %22, %23, %cst_21 {dimension_numbers = #tpu.dot_dimension_numbers<[1], [0], [0], [1], [0, 0, 1, 1], [], []>} : vector<8x128xbf16>, vector<128x64xbf16>, vector<8x64xf32> -> vector<8x64xf32>
      %25 = arith.addf %21, %24 : vector<8x64xf32>
      %c0_22 = arith.constant 0 : index
      %c0_23 = arith.constant 0 : index
      %26 = vector.load %arg10[%c0_22, %c0_23] : memref<8x64xf32, #tpu.memory_space<vmem>>, vector<8x64xf32>
      tpu.vector_store %arg10[%c0_22, %c0_23], %25 {strides = array<i32>} : memref<8x64xf32, #tpu.memory_space<vmem>>, vector<8x64xf32>,
      %c0_i32_24 = arith.constant 0 : i32
      %27 = arith.cmpi eq, %arg1, %c0_i32_24 : i32
      %28 = arith.extui %27 : i1 to i32
      %c0_i32_25 = arith.constant 0 : i32
      %29 = arith.cmpi ne, %28, %c0_i32_25 : i32
      scf.if %29 {
        %c0_26 = arith.constant 0 : index
        %c0_27 = arith.constant 0 : index
        %30 = vector.load %arg10[%c0_26, %c0_27] : memref<8x64xf32, #tpu.memory_space<vmem>>, vector<8x64xf32>
        %c0_28 = arith.constant 0 : index
        %c0_29 = arith.constant 0 : index
        %31 = vector.load %arg7[%c0_28, %c0_29] : memref<1x64xf32, #tpu.memory_space<vmem>>, vector<1x64xf32>
        %32 = vector.broadcast %31 : vector<1x64xf32> to vector<8x64xf32>
        %33 = arith.addf %30, %32 : vector<8x64xf32>
        %cst_30 = arith.constant 0.000000e+00 : f32
        %34 = vector.broadcast %cst_30 : f32 to vector<8x64xf32>
        %35 = arith.maximumf %33, %34 : vector<8x64xf32>
        %c0_31 = arith.constant 0 : index
        %c0_32 = arith.constant 0 : index
        %36 = vector.load %arg8[%c0_31, %c0_32] : memref<8x64xf32, #tpu.memory_space<vmem>>, vector<8x64xf32>
        tpu.vector_store %arg8[%c0_31, %c0_32], %35 {strides = array<i32>} : memref<8x64xf32, #tpu.memory_space<vmem>>, vector<8x64xf32>,
      } else {
      }
    } else {
    }
    return
  }
  func.func @transform_0(%arg0: i32, %arg1: i32, %arg2: i32) -> (i32, i32) {
    %c0_i32 = arith.constant 0 : i32
    %c0_i32_0 = arith.constant 0 : i32
    return %c0_i32, %arg2 : i32, i32
  }
  func.func @transform_1(%arg0: i32, %arg1: i32, %arg2: i32) -> (i32, i32) {
    %c0_i32 = arith.constant 0 : i32
    return %arg2, %arg1 : i32, i32
  }
  func.func @transform_2(%arg0: i32, %arg1: i32, %arg2: i32) -> (i32, i32) {
    %c0_i32 = arith.constant 0 : i32
    %c0_i32_0 = arith.constant 0 : i32
    return %c0_i32, %arg1 : i32, i32
  }
  func.func @transform_3(%arg0: i32, %arg1: i32, %arg2: i32) -> (i32, i32) {
    %c0_i32 = arith.constant 0 : i32
    return %arg1, %arg0 : i32, i32
  }
  func.func @transform_4(%arg0: i32, %arg1: i32, %arg2: i32) -> (i32, i32) {
    %c0_i32 = arith.constant 0 : i32
    %c0_i32_0 = arith.constant 0 : i32
    return %c0_i32, %arg0 : i32, i32
  }
  func.func @transform_5(%arg0: i32, %arg1: i32, %arg2: i32) -> (i32, i32) {
    %c0_i32 = arith.constant 0 : i32
    %c0_i32_0 = arith.constant 0 : i32
    return %c0_i32, %arg0 : i32, i32
  }
}

</mosaic_0001>

<bundles_post_ra>
// kernel: proj_head_forward.1
= control target key start
LH: loop header
LB: loop body
LE: loop exit
PB: predicated region body
PF: predicated region fallthrough
CT: control target
= control target key end

     0   :  { %v458_v1 = vmov 0.0   ;;  %vm459_vm0 = vmmov 0   ;;  %vm222_vm1 = vcmask 523264   ;;  %s587_s1 = inlined_call_operand.vmem [shape: bf16[256,128], index: 1, kind: input, shape index: {}]   ;;  %s588_s0 = inlined_call_operand.vmem [shape: bf16[8,256], index: 0, kind: input, shape index: {}]   ;;  %s589_s3 = inlined_call_operand.vmem [shape: bf16[128,64], index: 3, kind: input, shape index: {}]   ;;  %s590_s2 = inlined_call_operand.vmem [shape: f32[1,128], index: 2, kind: input, shape index: {}]   ;;  %s591_s4 = inlined_call_operand.vmem [shape: f32[1,64], index: 4, kind: input, shape index: {}]   ;;  %s592_s5 = inlined_call_operand.vmem [shape: f32[8,64], index: 5, kind: output, shape index: {}]  }
   0x1   :  { %v432_v0 = vld [vmem:[%s587_s1 + $0x78] sm:$0xff]   ;;  %410 = vmatprep.subr.bf16.mxu1 %v458_v1  ;;  %v434_v3 = vld [vmem:[%s587_s1 + $0x70] sm:$0xff]   ;;  %v436_v5 = vld [vmem:[%s587_s1 + $0x68] sm:$0xff]   ;;  %426 = vmatprep.mubr.msk.bf16.mxu1 %vm459_vm0, %v458_v1  ;;  %223 = vst.msk [vmem:[#allocation3] sm:$0xff] %vm222_vm1, %v458_v1 }
   0x2   :  { %v433_v2 = vld [vmem:[%s587_s1 + $0x38] sm:$0xff]   ;;  %379 = vmatprep.subr.bf16.mxu0 %v432_v0  ;;  %v435_v4 = vld [vmem:[%s587_s1 + $0x30] sm:$0xff]   ;;  %v437_v6 = vld [vmem:[%s587_s1 + $0x28] sm:$0xff]  }
   0x3   :  { %380 = vmatpush3.bf16.msra.mxu0 %v433_v2  ;;  %v438_v7 = vld [vmem:[%s587_s1 + $0x60] sm:$0xff]   ;;  %v440_v9 = vld [vmem:[%s587_s1 + $0x58] sm:$0xff]   ;;  %v442_v11 = vld [vmem:[%s587_s1 + $0x50] sm:$0xff]  }
   0x4   :  { %381 = vmatprep.subr.bf16.mxu0 %v434_v3  ;;  %v439_v8 = vld [vmem:[%s587_s1 + $0x20] sm:$0xff]   ;;  %v441_v10 = vld [vmem:[%s587_s1 + $0x18] sm:$0xff]   ;;  %v443_v15 = vld [vmem:[%s587_s1 + $0x10] sm:$0xff]  }
   0x5   :  { %v27_v12 = vld [vmem:[%s588_s0] sm:$0xff]  ;;  %v450_v14 = vld [vmem:[%s589_s3 + $0x38] sm:$0xff]   ;;  %v444_v16 = vld [vmem:[%s587_s1 + $0x48] sm:$0xff]  }
   0x6   :  { %v352_v13 = vcombine.high %v27_v12, %v27_v12  ;;  %411 = vmatpush3.bf16.msra.mxu1 %v450_v14  ;;  %v451_v17 = vld [vmem:[%s589_s3 + $0x30] sm:$0xff]   ;;  %v445_v18 = vld [vmem:[%s587_s1 + $0x8] sm:$0xff]   ;;  %v446_v19 = vld [vmem:[%s587_s1 + $0x40] sm:$0xff]   ;;  %v351_v23 = vcombine.low %v27_v12, %v27_v12 }
   0x7   :  { %382 = vmatpush3.bf16.msra.mxu0 %v435_v4  ;;  %412 = vmatprep.subr.bf16.mxu1 %v458_v1  ;;  %v452_v20 = vld [vmem:[%s589_s3 + $0x28] sm:$0xff]   ;;  %v447_v21 = vld [vmem:[%s587_s1] sm:$0xff]   ;;  %v454_v24 = vld [vmem:[%s589_s3 + $0x18] sm:$0xff]  }
   0x8   :  { %383 = vmatprep.subr.bf16.mxu0 %v436_v5  ;;  %195 = vmatprep.mubr.bf16.mxu0 %v352_v13  ;;  %v453_v22 = vld [vmem:[%s589_s3 + $0x20] sm:$0xff]   ;;  %v455_v25 = vld [vmem:[%s589_s3 + $0x10] sm:$0xff]   ;;  %v456_v26 = vld [vmem:[%s589_s3 + $0x8] sm:$0xff]  }
   0x9   :  { %v457_v27 = vld [vmem:[%s589_s3] sm:$0xff]  }
   0xa   :  { %413 = vmatpush3.bf16.msra.mxu1 %v451_v17  ;;  %v369_v30 = vld [vmem:[%s590_s2] ss:$0 sm:$0xff] }
   0xb   :  { %384 = vmatpush3.bf16.msra.mxu0 %v437_v6  ;;  %414 = vmatprep.subr.bf16.mxu1 %v458_v1  ;;  %v224_v37 = vld [vmem:[#allocation3] sm:$0xff] }
   0xc   :  { %385 = vmatprep.subr.bf16.mxu0 %v438_v7  ;;  %v378_v43 = vld [vmem:[%s591_s4] ss:$0 sm:$0xff] }
   0xe   :  { %415 = vmatpush3.bf16.msra.mxu1 %v452_v20 }
   0xf   :  { %386 = vmatpush3.bf16.msra.mxu0 %v439_v8  ;;  %416 = vmatprep.subr.bf16.mxu1 %v458_v1 }
  0x10   :  { %387 = vmatprep.subr.bf16.mxu0 %v440_v9 }
  0x12   :  { %417 = vmatpush3.bf16.msra.mxu1 %v453_v22 }
  0x13   :  { %388 = vmatpush3.bf16.msra.mxu0 %v441_v10  ;;  %418 = vmatprep.subr.bf16.mxu1 %v458_v1 }
  0x14   :  { %389 = vmatprep.subr.bf16.mxu0 %v442_v11 }
  0x16   :  { %419 = vmatpush3.bf16.msra.mxu1 %v454_v24 }
  0x17   :  { %390 = vmatpush3.bf16.msra.mxu0 %v443_v15  ;;  %420 = vmatprep.subr.bf16.mxu1 %v458_v1 }
  0x18   :  { %391 = vmatprep.subr.bf16.mxu0 %v444_v16 }
  0x1a   :  { %421 = vmatpush3.bf16.msra.mxu1 %v455_v25 }
  0x1b   :  { %392 = vmatpush3.bf16.msra.mxu0 %v445_v18  ;;  %422 = vmatprep.subr.bf16.mxu1 %v458_v1 }
  0x1c   :  { %393 = vmatprep.subr.bf16.mxu0 %v446_v19 }
  0x1e   :  { %423 = vmatpush3.bf16.msra.mxu1 %v456_v26 }
  0x1f   :  { %394 = vmatpush3.bf16.msra.mxu0 %v447_v21  ;;  %424 = vmatprep.subr.bf16.mxu1 %v458_v1 }
  0x22   :  { %196 = vmatmul.mubr.bf16.vlgmr.msra.gmra.mxu0 %v351_v23  ;;  %425 = vmatpush3.bf16.msra.mxu1 %v457_v27 }
  0xe2   :  { %v395_v28 = vpop.f32.mrf.mxu0 }
  0xe4   :  { %v396_v29 = vpop.f32.mrf.mxu0 }
  0xe5   :  { %v397_v31 = vadd.f32 %v396_v29, %v395_v28 }
  0xe6   :  { %v398_v32 = vpop.f32.mrf.mxu0 }
  0xe7   :  { %v216_v33 = vadd.f32 %v397_v31, %v369_v30 }
  0xe8   :  { %v399_v34 = vpop.f32.mrf.mxu0 }
  0xe9   :  { %v217_v35 = vmax.f32 %v216_v33, 0.0 }
  0xeb   :  { %v225_v36 = vpack.c.bf16 %v217_v35, %v217_v35 }
  0xed   :  { %427 = vmatmul.mubr.bf16.vlgmr.msra.gmra.mxu1 %v225_v36 }
 0x1ad   :  { %v324_v38 = vpop.f32.mrf.mxu1 }
 0x1ae   :  { %v330_v39 = vadd.f32 %v324_v38, %v224_v37 }
 0x1af   :  { %v428_v40 = vpop.f32.mrf.mxu1 }
 0x1b0   :  { %332 = vst.msk [vmem:[#allocation3] sm:$0xff] %vm222_vm1, %v330_v39 }
 0x1b1   :  { %v327_v41 = vpop.f32.mrf.mxu1 }
 0x1b3   :  { %v429_v42 = vpop.f32.mrf.mxu1 }
 0x1b7   :  { %v336_v44 = vld [vmem:[#allocation3] sm:$0xff] }
 0x1b8   :  { %v344_v45 = vadd.f32 %v378_v43, %v336_v44 }
 0x1ba   :  { %v345_v46 = vmax.f32 %v344_v45, 0.0 }
 0x1bc   :  { %346 = vst.msk [vmem:[%s592_s5] sm:$0xff] %vm222_vm1, %v345_v46 }

</bundles_post_ra>
